<compile_context>
chip_gen: v7x
topology: tpu7x:2x2x1
jax: 0.10.0
libtpu: 0.0.40
codegen_flags: <defaults>
</compile_context>

<pallas_src>
import functools

import jax
import jax.numpy as jnp
import numpy as np
from jax import lax
from jax.experimental import pallas as pl
from jax.experimental.pallas import tpu as pltpu


def _cope_kernel(q_ref, attn_ref, emb_ref, tri_ref, out_ref,
                 li_ref, carry_ref, *, npos_max):
    # q_ref:     (tq, D)       query tile (constant across k-tiles)
    # attn_ref:  (tq, tk)      attention-logit tile (k-tiles visited in reverse)
    # emb_ref:   (D, P)        per-head positional embedding
    # tri_ref:   (tk, tk)      tri[j, k] = 1 if j >= k (in-tile suffix sum)
    # out_ref:   (tq, tk)
    # li_ref:    (tq, P)  VMEM scratch, logits_int = q @ emb
    # carry_ref: (tq, 1)  VMEM scratch, running suffix-sum of gates over
    #                     already-processed (right-hand) k-tiles
    kt = pl.program_id(3)

    @pl.when(kt == 0)
    def _():
        # First k-step of each (h, b, q-tile): compute logits_int once and
        # reset the suffix-sum carry.  Inputs feed the MXU in their own dtype.
        li_ref[...] = jnp.dot(q_ref[...], emb_ref[...],
                              preferred_element_type=jnp.float32)
        carry_ref[...] = jnp.zeros_like(carry_ref)

    gates = jax.nn.sigmoid(attn_ref[...].astype(jnp.float32))      # (tq, tk)

    # Blocked reverse cumulative sum over keys:
    #   pos[q, k] = sum_{j >= k, j in tile} gates[q, j] + carry[q]
    pos_raw = jnp.dot(gates, tri_ref[...],
                      preferred_element_type=jnp.float32) + carry_ref[...]
    # Suffix sum starting at this tile's first key == new carry for the next
    # (left-neighbour) k-tile.  Must be taken before clamping.
    carry_ref[...] = pos_raw[:, 0:1]

    pos = jnp.minimum(pos_raw, jnp.float32(npos_max - 1))          # clamp(max=)

    # Fused gather + linear interpolation via the triangular "hat" weight
    #   max(0, 1 - |pos - p|)  ==  (p == floor) * (1 - w) + (p == ceil) * w
    # Accumulate over p with a 2-D (tq, tk) working set; never materialize a
    # (tq, tk, P) tensor.  npos_max is small and static, so the Python loop
    # fully unrolls at trace time with static lane slices of li.
    li = li_ref[...]                                                # (tq, P)
    acc = jnp.zeros(pos.shape, jnp.float32)
    for p in range(npos_max):
        wgt = jnp.maximum(0.0, 1.0 - jnp.abs(pos - float(p)))       # (tq, tk)
        acc = acc + wgt * li[:, p:p + 1]                            # lane bcast

    out_ref[...] = acc.astype(out_ref.dtype)


def _pick_tile(dim, candidates):
    for c in candidates:
        if dim % c == 0:
            return c
    return dim  # fall back to the full dim (always a legal block extent)


def cope_forward(query, attn_logits, pos_emb, npos_max):
    """Pallas forward pass of JiutianContextualRotaryEmbedding."""
    B, H, Tq, D = query.shape
    Tk = attn_logits.shape[-1]
    P = pos_emb.shape[-1]
    assert P == npos_max

    # Tile sizes: modest enough to double-buffer comfortably within the scoped
    # VMEM defaults of v5e/v6e/v7x, large enough (>=128 lanes when divisible)
    # for lane-dense, unmasked output stores and good HBM-roofline behaviour.
    tq = _pick_tile(Tq, (256, 128))
    tk = _pick_tile(Tk, (512, 256, 128))
    nq = Tq // tq
    nk = Tk // tk

    # In-tile reverse-cumsum matrix: tri[j, k] = 1 if j >= k.  Built once and
    # kept resident in VMEM (constant block index across every grid step).
    tri = jnp.tril(jnp.ones((tk, tk), dtype=jnp.float32))

    # Advisory cost estimate for the XLA scheduler.
    flops = int(2.0 * B * H * Tq * Tk * tk          # blocked cumsum matmuls
                + 2.0 * B * H * Tq * D * P          # query @ pos_emb
                + 5.0 * B * H * Tq * Tk * P)        # hat-weight interpolation
    transcendentals = int(B * H * Tq * Tk)          # sigmoid
    bytes_accessed = int(4 * (2 * B * H * Tq * Tk + B * H * Tq * D + H * D * P))
    cost = pl.CostEstimate(flops=flops,
                           transcendentals=transcendentals,
                           bytes_accessed=bytes_accessed)

    kernel = functools.partial(_cope_kernel, npos_max=npos_max)

    return pl.pallas_call(
        kernel,
        out_shape=jax.ShapeDtypeStruct((B, H, Tq, Tk), query.dtype),
        # H outermost so the pos_emb block index (h, 0, 0) stays constant for
        # B*nq*nk consecutive steps (no redundant re-fetch); k-tiles innermost
        # and visited in reverse so the suffix-sum carry is valid.
        grid=(H, B, nq, nk),
        in_specs=[
            pl.BlockSpec((None, None, tq, D),
                         lambda h, b, qt, kt: (b, h, qt, 0)),
            pl.BlockSpec((None, None, tq, tk),
                         lambda h, b, qt, kt: (b, h, qt, nk - 1 - kt)),
            pl.BlockSpec((None, D, P),
                         lambda h, b, qt, kt: (h, 0, 0)),
            pl.BlockSpec((tk, tk),
                         lambda h, b, qt, kt: (0, 0)),
        ],
        out_specs=pl.BlockSpec((None, None, tq, tk),
                               lambda h, b, qt, kt: (b, h, qt, nk - 1 - kt)),
        scratch_shapes=[
            pltpu.VMEM((tq, P), jnp.float32),   # cached logits_int
            pltpu.VMEM((tq, 1), jnp.float32),   # reverse-cumsum carry
        ],
        compiler_params=pltpu.CompilerParams(
            dimension_semantics=("parallel", "parallel", "parallel",
                                 "arbitrary")),
        cost_estimate=cost,
    )(query, attn_logits, pos_emb, tri)


def cope_reference(query, attn_logits, pos_emb, npos_max):
    """Pure-JAX reference mirroring the PyTorch forward literally."""
    gates = jax.nn.sigmoid(attn_logits)
    pos = jnp.flip(jnp.cumsum(jnp.flip(gates, axis=-1), axis=-1), axis=-1)
    pos = jnp.minimum(pos, npos_max - 1)
    pos_ceil = jnp.ceil(pos).astype(jnp.int32)
    pos_floor = jnp.floor(pos).astype(jnp.int32)
    logits_int = jnp.einsum("bhqd,hdp->bhqp", query, pos_emb)
    logits_ceil = jnp.take_along_axis(logits_int, pos_ceil, axis=-1)
    logits_floor = jnp.take_along_axis(logits_int, pos_floor, axis=-1)
    w = pos - pos_floor
    return logits_ceil * w + logits_floor * (1 - w)


if __name__ == "__main__":
    B, H, Tq, Tk, D, NPOS_MAX = 2, 4, 8, 8, 32, 16

    key = jax.random.PRNGKey(0)
    kq, ka, kp = jax.random.split(key, 3)
    query = jax.random.normal(kq, (B, H, Tq, D), dtype=jnp.float32)
    attn_logits = jax.random.normal(ka, (B, H, Tq, Tk), dtype=jnp.float32)
    # Module __init__ uses zeros for pos_emb; use a deterministic non-trivial
    # init here so the kernel actually exercises the gather/interp path.
    pos_emb = 0.02 * jax.random.normal(kp, (H, D, NPOS_MAX), dtype=jnp.float32)

    out = cope_forward(query, attn_logits, pos_emb, NPOS_MAX)
    out = jax.block_until_ready(out)

    ref = cope_reference(query, attn_logits, pos_emb, NPOS_MAX)
    np.testing.assert_allclose(np.asarray(out), np.asarray(ref),
                               rtol=1e-4, atol=1e-4)

    print("KERNEL_OK")
</pallas_src>

<mosaic_0001>
module attributes {stable_mosaic.version = 11 : i64} {
  func.func @_cope_kernel(%arg0: i32, %arg1: i32, %arg2: i32, %arg3: i32, %arg4: memref<1x1x8x32xf32, #tpu.memory_space<vmem>>, %arg5: memref<1x1x8x8xf32, #tpu.memory_space<vmem>>, %arg6: memref<1x32x16xf32, #tpu.memory_space<vmem>>, %arg7: memref<8x8xf32, #tpu.memory_space<vmem>>, %arg8: memref<1x1x8x8xf32, #tpu.memory_space<vmem>>, %arg9: memref<8x16xf32, #tpu.memory_space<vmem>>, %arg10: memref<8x1xf32, #tpu.memory_space<vmem>>) attributes {dimension_semantics = [#tpu.dimension_semantics<parallel>, #tpu.dimension_semantics<parallel>, #tpu.dimension_semantics<parallel>, #tpu.dimension_semantics<arbitrary>], iteration_bounds = array<i64: 4, 2, 1, 1>, scalar_prefetch = 0 : i64, scratch_operands = 2 : i64, tpu.core_type = #tpu.core_type<tc>, window_params = [{transform_indices = @transform_0, window_bounds = array<i64: 1, 1, 8, 32>}, {transform_indices = @transform_1, window_bounds = array<i64: 1, 1, 8, 8>}, {transform_indices = @transform_2, window_bounds = array<i64: 1, 32, 16>}, {pipeline_mode = #tpu.pipeline_mode<synchronous>, transform_indices = @transform_3, window_bounds = array<i64: 8, 8>}, {transform_indices = @transform_4, window_bounds = array<i64: 1, 1, 8, 8>}]} {
    %c0_i32 = arith.constant 0 : i32
    %0 = arith.cmpi eq, %arg3, %c0_i32 : i32
    %1 = arith.extui %0 : i1 to i32
    %c0_i32_0 = arith.constant 0 : i32
    %2 = arith.cmpi ne, %1, %c0_i32_0 : i32
    scf.if %2 {
      %c0_67 = arith.constant 0 : index
      %c0_68 = arith.constant 0 : index
      %c0_69 = arith.constant 0 : index
      %c0_70 = arith.constant 0 : index
      %200 = vector.load %arg4[%c0_67, %c0_68, %c0_69, %c0_70] : memref<1x1x8x32xf32, #tpu.memory_space<vmem>>, vector<1x1x8x32xf32>
      %201 = vector.shape_cast %200 : vector<1x1x8x32xf32> to vector<8x32xf32>
      %c0_71 = arith.constant 0 : index
      %c0_72 = arith.constant 0 : index
      %c0_73 = arith.constant 0 : index
      %202 = vector.load %arg6[%c0_71, %c0_72, %c0_73] : memref<1x32x16xf32, #tpu.memory_space<vmem>>, vector<1x32x16xf32>
      %203 = vector.shape_cast %202 : vector<1x32x16xf32> to vector<32x16xf32>
      %cst_74 = arith.constant dense<0.000000e+00> : vector<8x16xf32>
      %204 = tpu.matmul %201, %203, %cst_74 {dimension_numbers = #tpu.dot_dimension_numbers<[1], [0], [0], [1], [0, 0, 1, 1], [], []>} : vector<8x32xf32>, vector<32x16xf32>, vector<8x16xf32> -> vector<8x16xf32>
      %c0_75 = arith.constant 0 : index
      %c0_76 = arith.constant 0 : index
      %205 = vector.load %arg9[%c0_75, %c0_76] : memref<8x16xf32, #tpu.memory_space<vmem>>, vector<8x16xf32>
      tpu.vector_store %arg9[%c0_75, %c0_76], %204 {strides = array<i32>} : memref<8x16xf32, #tpu.memory_space<vmem>>, vector<8x16xf32>,
      %cst_77 = arith.constant 0.000000e+00 : f32
      %206 = vector.broadcast %cst_77 : f32 to vector<8x1xf32>
      %c0_78 = arith.constant 0 : index
      %c0_79 = arith.constant 0 : index
      %207 = vector.load %arg10[%c0_78, %c0_79] : memref<8x1xf32, #tpu.memory_space<vmem>>, vector<8x1xf32>
      tpu.vector_store %arg10[%c0_78, %c0_79], %206 {strides = array<i32>} : memref<8x1xf32, #tpu.memory_space<vmem>>, vector<8x1xf32>,
    } else {
    }
    %c0 = arith.constant 0 : index
    %c0_1 = arith.constant 0 : index
    %c0_2 = arith.constant 0 : index
    %c0_3 = arith.constant 0 : index
    %3 = vector.load %arg5[%c0, %c0_1, %c0_2, %c0_3] : memref<1x1x8x8xf32, #tpu.memory_space<vmem>>, vector<1x1x8x8xf32>
    %4 = vector.shape_cast %3 : vector<1x1x8x8xf32> to vector<8x8xf32>
    %5 = arith.negf %4 : vector<8x8xf32>
    %6 = math.exp %5 : vector<8x8xf32>
    %cst = arith.constant 1.000000e+00 : f32
    %7 = vector.broadcast %cst : f32 to vector<8x8xf32>
    %8 = arith.addf %7, %6 : vector<8x8xf32>
    %9 = arith.divf %7, %8 : vector<8x8xf32>
    %c0_4 = arith.constant 0 : index
    %c0_5 = arith.constant 0 : index
    %10 = vector.load %arg7[%c0_4, %c0_5] : memref<8x8xf32, #tpu.memory_space<vmem>>, vector<8x8xf32>
    %cst_6 = arith.constant dense<0.000000e+00> : vector<8x8xf32>
    %11 = tpu.matmul %9, %10, %cst_6 {dimension_numbers = #tpu.dot_dimension_numbers<[1], [0], [0], [1], [0, 0, 1, 1], [], []>} : vector<8x8xf32>, vector<8x8xf32>, vector<8x8xf32> -> vector<8x8xf32>
    %c0_7 = arith.constant 0 : index
    %c0_8 = arith.constant 0 : index
    %12 = vector.load %arg10[%c0_7, %c0_8] : memref<8x1xf32, #tpu.memory_space<vmem>>, vector<8x1xf32>
    %13 = vector.broadcast %12 : vector<8x1xf32> to vector<8x8xf32>
    %14 = arith.addf %11, %13 : vector<8x8xf32>
    %15 = vector.extract_strided_slice %14 {offsets = [0, 0], sizes = [8, 1], strides = [1, 1]} : vector<8x8xf32> to vector<8x1xf32>
    %c0_9 = arith.constant 0 : index
    %c0_10 = arith.constant 0 : index
    %16 = vector.load %arg10[%c0_9, %c0_10] : memref<8x1xf32, #tpu.memory_space<vmem>>, vector<8x1xf32>
    tpu.vector_store %arg10[%c0_9, %c0_10], %15 {strides = array<i32>} : memref<8x1xf32, #tpu.memory_space<vmem>>, vector<8x1xf32>,
    %cst_11 = arith.constant 1.500000e+01 : f32
    %17 = vector.broadcast %cst_11 : f32 to vector<8x8xf32>
    %18 = arith.minimumf %14, %17 : vector<8x8xf32>
    %c0_12 = arith.constant 0 : index
    %c0_13 = arith.constant 0 : index
    %19 = vector.load %arg9[%c0_12, %c0_13] : memref<8x16xf32, #tpu.memory_space<vmem>>, vector<8x16xf32>
    %cst_14 = arith.constant 0.000000e+00 : f32
    %20 = vector.broadcast %cst_14 : f32 to vector<8x8xf32>
    %cst_15 = arith.constant 0.000000e+00 : f32
    %21 = vector.broadcast %cst_15 : f32 to vector<8x8xf32>
    %22 = arith.subf %18, %21 : vector<8x8xf32>
    %23 = math.absf %22 : vector<8x8xf32>
    %cst_16 = arith.constant 1.000000e+00 : f32
    %24 = vector.broadcast %cst_16 : f32 to vector<8x8xf32>
    %25 = arith.subf %24, %23 : vector<8x8xf32>
    %cst_17 = arith.constant 0.000000e+00 : f32
    %26 = vector.broadcast %cst_17 : f32 to vector<8x8xf32>
    %27 = arith.maximumf %26, %25 : vector<8x8xf32>
    %28 = vector.extract_strided_slice %19 {offsets = [0, 0], sizes = [8, 1], strides = [1, 1]} : vector<8x16xf32> to vector<8x1xf32>
    %29 = vector.broadcast %28 : vector<8x1xf32> to vector<8x8xf32>
    %30 = arith.mulf %27, %29 : vector<8x8xf32>
    %31 = arith.addf %20, %30 : vector<8x8xf32>
    %cst_18 = arith.constant 1.000000e+00 : f32
    %32 = vector.broadcast %cst_18 : f32 to vector<8x8xf32>
    %33 = arith.subf %18, %32 : vector<8x8xf32>
    %34 = math.absf %33 : vector<8x8xf32>
    %cst_19 = arith.constant 1.000000e+00 : f32
    %35 = vector.broadcast %cst_19 : f32 to vector<8x8xf32>
    %36 = arith.subf %35, %34 : vector<8x8xf32>
    %cst_20 = arith.constant 0.000000e+00 : f32
    %37 = vector.broadcast %cst_20 : f32 to vector<8x8xf32>
    %38 = arith.maximumf %37, %36 : vector<8x8xf32>
    %39 = vector.extract_strided_slice %19 {offsets = [0, 1], sizes = [8, 1], strides = [1, 1]} : vector<8x16xf32> to vector<8x1xf32>
    %40 = vector.broadcast %39 : vector<8x1xf32> to vector<8x8xf32>
    %41 = arith.mulf %38, %40 : vector<8x8xf32>
    %42 = arith.addf %31, %41 : vector<8x8xf32>
    %cst_21 = arith.constant 2.000000e+00 : f32
    %43 = vector.broadcast %cst_21 : f32 to vector<8x8xf32>
    %44 = arith.subf %18, %43 : vector<8x8xf32>
    %45 = math.absf %44 : vector<8x8xf32>
    %cst_22 = arith.constant 1.000000e+00 : f32
    %46 = vector.broadcast %cst_22 : f32 to vector<8x8xf32>
    %47 = arith.subf %46, %45 : vector<8x8xf32>
    %cst_23 = arith.constant 0.000000e+00 : f32
    %48 = vector.broadcast %cst_23 : f32 to vector<8x8xf32>
    %49 = arith.maximumf %48, %47 : vector<8x8xf32>
    %50 = vector.extract_strided_slice %19 {offsets = [0, 2], sizes = [8, 1], strides = [1, 1]} : vector<8x16xf32> to vector<8x1xf32>
    %51 = vector.broadcast %50 : vector<8x1xf32> to vector<8x8xf32>
    %52 = arith.mulf %49, %51 : vector<8x8xf32>
    %53 = arith.addf %42, %52 : vector<8x8xf32>
    %cst_24 = arith.constant 3.000000e+00 : f32
    %54 = vector.broadcast %cst_24 : f32 to vector<8x8xf32>
    %55 = arith.subf %18, %54 : vector<8x8xf32>
    %56 = math.absf %55 : vector<8x8xf32>
    %cst_25 = arith.constant 1.000000e+00 : f32
    %57 = vector.broadcast %cst_25 : f32 to vector<8x8xf32>
    %58 = arith.subf %57, %56 : vector<8x8xf32>
    %cst_26 = arith.constant 0.000000e+00 : f32
    %59 = vector.broadcast %cst_26 : f32 to vector<8x8xf32>
    %60 = arith.maximumf %59, %58 : vector<8x8xf32>
    %61 = vector.extract_strided_slice %19 {offsets = [0, 3], sizes = [8, 1], strides = [1, 1]} : vector<8x16xf32> to vector<8x1xf32>
    %62 = vector.broadcast %61 : vector<8x1xf32> to vector<8x8xf32>
    %63 = arith.mulf %60, %62 : vector<8x8xf32>
    %64 = arith.addf %53, %63 : vector<8x8xf32>
    %cst_27 = arith.constant 4.000000e+00 : f32
    %65 = vector.broadcast %cst_27 : f32 to vector<8x8xf32>
    %66 = arith.subf %18, %65 : vector<8x8xf32>
    %67 = math.absf %66 : vector<8x8xf32>
    %cst_28 = arith.constant 1.000000e+00 : f32
    %68 = vector.broadcast %cst_28 : f32 to vector<8x8xf32>
    %69 = arith.subf %68, %67 : vector<8x8xf32>
    %cst_29 = arith.constant 0.000000e+00 : f32
    %70 = vector.broadcast %cst_29 : f32 to vector<8x8xf32>
    %71 = arith.maximumf %70, %69 : vector<8x8xf32>
    %72 = vector.extract_strided_slice %19 {offsets = [0, 4], sizes = [8, 1], strides = [1, 1]} : vector<8x16xf32> to vector<8x1xf32>
    %73 = vector.broadcast %72 : vector<8x1xf32> to vector<8x8xf32>
    %74 = arith.mulf %71, %73 : vector<8x8xf32>
    %75 = arith.addf %64, %74 : vector<8x8xf32>
    %cst_30 = arith.constant 5.000000e+00 : f32
    %76 = vector.broadcast %cst_30 : f32 to vector<8x8xf32>
    %77 = arith.subf %18, %76 : vector<8x8xf32>
    %78 = math.absf %77 : vector<8x8xf32>
    %cst_31 = arith.constant 1.000000e+00 : f32
    %79 = vector.broadcast %cst_31 : f32 to vector<8x8xf32>
    %80 = arith.subf %79, %78 : vector<8x8xf32>
    %cst_32 = arith.constant 0.000000e+00 : f32
    %81 = vector.broadcast %cst_32 : f32 to vector<8x8xf32>
    %82 = arith.maximumf %81, %80 : vector<8x8xf32>
    %83 = vector.extract_strided_slice %19 {offsets = [0, 5], sizes = [8, 1], strides = [1, 1]} : vector<8x16xf32> to vector<8x1xf32>
    %84 = vector.broadcast %83 : vector<8x1xf32> to vector<8x8xf32>
    %85 = arith.mulf %82, %84 : vector<8x8xf32>
    %86 = arith.addf %75, %85 : vector<8x8xf32>
    %cst_33 = arith.constant 6.000000e+00 : f32
    %87 = vector.broadcast %cst_33 : f32 to vector<8x8xf32>
    %88 = arith.subf %18, %87 : vector<8x8xf32>
    %89 = math.absf %88 : vector<8x8xf32>
    %cst_34 = arith.constant 1.000000e+00 : f32
    %90 = vector.broadcast %cst_34 : f32 to vector<8x8xf32>
    %91 = arith.subf %90, %89 : vector<8x8xf32>
    %cst_35 = arith.constant 0.000000e+00 : f32
    %92 = vector.broadcast %cst_35 : f32 to vector<8x8xf32>
    %93 = arith.maximumf %92, %91 : vector<8x8xf32>
    %94 = vector.extract_strided_slice %19 {offsets = [0, 6], sizes = [8, 1], strides = [1, 1]} : vector<8x16xf32> to vector<8x1xf32>
    %95 = vector.broadcast %94 : vector<8x1xf32> to vector<8x8xf32>
    %96 = arith.mulf %93, %95 : vector<8x8xf32>
    %97 = arith.addf %86, %96 : vector<8x8xf32>
    %cst_36 = arith.constant 7.000000e+00 : f32
    %98 = vector.broadcast %cst_36 : f32 to vector<8x8xf32>
    %99 = arith.subf %18, %98 : vector<8x8xf32>
    %100 = math.absf %99 : vector<8x8xf32>
    %cst_37 = arith.constant 1.000000e+00 : f32
    %101 = vector.broadcast %cst_37 : f32 to vector<8x8xf32>
    %102 = arith.subf %101, %100 : vector<8x8xf32>
    %cst_38 = arith.constant 0.000000e+00 : f32
    %103 = vector.broadcast %cst_38 : f32 to vector<8x8xf32>
    %104 = arith.maximumf %103, %102 : vector<8x8xf32>
    %105 = vector.extract_strided_slice %19 {offsets = [0, 7], sizes = [8, 1], strides = [1, 1]} : vector<8x16xf32> to vector<8x1xf32>
    %106 = vector.broadcast %105 : vector<8x1xf32> to vector<8x8xf32>
    %107 = arith.mulf %104, %106 : vector<8x8xf32>
    %108 = arith.addf %97, %107 : vector<8x8xf32>
    %cst_39 = arith.constant 8.000000e+00 : f32
    %109 = vector.broadcast %cst_39 : f32 to vector<8x8xf32>
    %110 = arith.subf %18, %109 : vector<8x8xf32>
    %111 = math.absf %110 : vector<8x8xf32>
    %cst_40 = arith.constant 1.000000e+00 : f32
    %112 = vector.broadcast %cst_40 : f32 to vector<8x8xf32>
    %113 = arith.subf %112, %111 : vector<8x8xf32>
    %cst_41 = arith.constant 0.000000e+00 : f32
    %114 = vector.broadcast %cst_41 : f32 to vector<8x8xf32>
    %115 = arith.maximumf %114, %113 : vector<8x8xf32>
    %116 = vector.extract_strided_slice %19 {offsets = [0, 8], sizes = [8, 1], strides = [1, 1]} : vector<8x16xf32> to vector<8x1xf32>
    %117 = vector.broadcast %116 : vector<8x1xf32> to vector<8x8xf32>
    %118 = arith.mulf %115, %117 : vector<8x8xf32>
    %119 = arith.addf %108, %118 : vector<8x8xf32>
    %cst_42 = arith.constant 9.000000e+00 : f32
    %120 = vector.broadcast %cst_42 : f32 to vector<8x8xf32>
    %121 = arith.subf %18, %120 : vector<8x8xf32>
    %122 = math.absf %121 : vector<8x8xf32>
    %cst_43 = arith.constant 1.000000e+00 : f32
    %123 = vector.broadcast %cst_43 : f32 to vector<8x8xf32>
    %124 = arith.subf %123, %122 : vector<8x8xf32>
    %cst_44 = arith.constant 0.000000e+00 : f32
    %125 = vector.broadcast %cst_44 : f32 to vector<8x8xf32>
    %126 = arith.maximumf %125, %124 : vector<8x8xf32>
    %127 = vector.extract_strided_slice %19 {offsets = [0, 9], sizes = [8, 1], strides = [1, 1]} : vector<8x16xf32> to vector<8x1xf32>
    %128 = vector.broadcast %127 : vector<8x1xf32> to vector<8x8xf32>
    %129 = arith.mulf %126, %128 : vector<8x8xf32>
    %130 = arith.addf %119, %129 : vector<8x8xf32>
    %cst_45 = arith.constant 1.000000e+01 : f32
    %131 = vector.broadcast %cst_45 : f32 to vector<8x8xf32>
    %132 = arith.subf %18, %131 : vector<8x8xf32>
    %133 = math.absf %132 : vector<8x8xf32>
    %cst_46 = arith.constant 1.000000e+00 : f32
    %134 = vector.broadcast %cst_46 : f32 to vector<8x8xf32>
    %135 = arith.subf %134, %133 : vector<8x8xf32>
    %cst_47 = arith.constant 0.000000e+00 : f32
    %136 = vector.broadcast %cst_47 : f32 to vector<8x8xf32>
    %137 = arith.maximumf %136, %135 : vector<8x8xf32>
    %138 = vector.extract_strided_slice %19 {offsets = [0, 10], sizes = [8, 1], strides = [1, 1]} : vector<8x16xf32> to vector<8x1xf32>
    %139 = vector.broadcast %138 : vector<8x1xf32> to vector<8x8xf32>
    %140 = arith.mulf %137, %139 : vector<8x8xf32>
    %141 = arith.addf %130, %140 : vector<8x8xf32>
    %cst_48 = arith.constant 1.100000e+01 : f32
    %142 = vector.broadcast %cst_48 : f32 to vector<8x8xf32>
    %143 = arith.subf %18, %142 : vector<8x8xf32>
    %144 = math.absf %143 : vector<8x8xf32>
    %cst_49 = arith.constant 1.000000e+00 : f32
    %145 = vector.broadcast %cst_49 : f32 to vector<8x8xf32>
    %146 = arith.subf %145, %144 : vector<8x8xf32>
    %cst_50 = arith.constant 0.000000e+00 : f32
    %147 = vector.broadcast %cst_50 : f32 to vector<8x8xf32>
    %148 = arith.maximumf %147, %146 : vector<8x8xf32>
    %149 = vector.extract_strided_slice %19 {offsets = [0, 11], sizes = [8, 1], strides = [1, 1]} : vector<8x16xf32> to vector<8x1xf32>
    %150 = vector.broadcast %149 : vector<8x1xf32> to vector<8x8xf32>
    %151 = arith.mulf %148, %150 : vector<8x8xf32>
    %152 = arith.addf %141, %151 : vector<8x8xf32>
    %cst_51 = arith.constant 1.200000e+01 : f32
    %153 = vector.broadcast %cst_51 : f32 to vector<8x8xf32>
    %154 = arith.subf %18, %153 : vector<8x8xf32>
    %155 = math.absf %154 : vector<8x8xf32>
    %cst_52 = arith.constant 1.000000e+00 : f32
    %156 = vector.broadcast %cst_52 : f32 to vector<8x8xf32>
    %157 = arith.subf %156, %155 : vector<8x8xf32>
    %cst_53 = arith.constant 0.000000e+00 : f32
    %158 = vector.broadcast %cst_53 : f32 to vector<8x8xf32>
    %159 = arith.maximumf %158, %157 : vector<8x8xf32>
    %160 = vector.extract_strided_slice %19 {offsets = [0, 12], sizes = [8, 1], strides = [1, 1]} : vector<8x16xf32> to vector<8x1xf32>
    %161 = vector.broadcast %160 : vector<8x1xf32> to vector<8x8xf32>
    %162 = arith.mulf %159, %161 : vector<8x8xf32>
    %163 = arith.addf %152, %162 : vector<8x8xf32>
    %cst_54 = arith.constant 1.300000e+01 : f32
    %164 = vector.broadcast %cst_54 : f32 to vector<8x8xf32>
    %165 = arith.subf %18, %164 : vector<8x8xf32>
    %166 = math.absf %165 : vector<8x8xf32>
    %cst_55 = arith.constant 1.000000e+00 : f32
    %167 = vector.broadcast %cst_55 : f32 to vector<8x8xf32>
    %168 = arith.subf %167, %166 : vector<8x8xf32>
    %cst_56 = arith.constant 0.000000e+00 : f32
    %169 = vector.broadcast %cst_56 : f32 to vector<8x8xf32>
    %170 = arith.maximumf %169, %168 : vector<8x8xf32>
    %171 = vector.extract_strided_slice %19 {offsets = [0, 13], sizes = [8, 1], strides = [1, 1]} : vector<8x16xf32> to vector<8x1xf32>
    %172 = vector.broadcast %171 : vector<8x1xf32> to vector<8x8xf32>
    %173 = arith.mulf %170, %172 : vector<8x8xf32>
    %174 = arith.addf %163, %173 : vector<8x8xf32>
    %cst_57 = arith.constant 1.400000e+01 : f32
    %175 = vector.broadcast %cst_57 : f32 to vector<8x8xf32>
    %176 = arith.subf %18, %175 : vector<8x8xf32>
    %177 = math.absf %176 : vector<8x8xf32>
    %cst_58 = arith.constant 1.000000e+00 : f32
    %178 = vector.broadcast %cst_58 : f32 to vector<8x8xf32>
    %179 = arith.subf %178, %177 : vector<8x8xf32>
    %cst_59 = arith.constant 0.000000e+00 : f32
    %180 = vector.broadcast %cst_59 : f32 to vector<8x8xf32>
    %181 = arith.maximumf %180, %179 : vector<8x8xf32>
    %182 = vector.extract_strided_slice %19 {offsets = [0, 14], sizes = [8, 1], strides = [1, 1]} : vector<8x16xf32> to vector<8x1xf32>
    %183 = vector.broadcast %182 : vector<8x1xf32> to vector<8x8xf32>
    %184 = arith.mulf %181, %183 : vector<8x8xf32>
    %185 = arith.addf %174, %184 : vector<8x8xf32>
    %cst_60 = arith.constant 1.500000e+01 : f32
    %186 = vector.broadcast %cst_60 : f32 to vector<8x8xf32>
    %187 = arith.subf %18, %186 : vector<8x8xf32>
    %188 = math.absf %187 : vector<8x8xf32>
    %cst_61 = arith.constant 1.000000e+00 : f32
    %189 = vector.broadcast %cst_61 : f32 to vector<8x8xf32>
    %190 = arith.subf %189, %188 : vector<8x8xf32>
    %cst_62 = arith.constant 0.000000e+00 : f32
    %191 = vector.broadcast %cst_62 : f32 to vector<8x8xf32>
    %192 = arith.maximumf %191, %190 : vector<8x8xf32>
    %193 = vector.extract_strided_slice %19 {offsets = [0, 15], sizes = [8, 1], strides = [1, 1]} : vector<8x16xf32> to vector<8x1xf32>
    %194 = vector.broadcast %193 : vector<8x1xf32> to vector<8x8xf32>
    %195 = arith.mulf %192, %194 : vector<8x8xf32>
    %196 = arith.addf %185, %195 : vector<8x8xf32>
    %c0_63 = arith.constant 0 : index
    %c0_64 = arith.constant 0 : index
    %c0_65 = arith.constant 0 : index
    %c0_66 = arith.constant 0 : index
    %197 = vector.load %arg8[%c0_63, %c0_64, %c0_65, %c0_66] : memref<1x1x8x8xf32, #tpu.memory_space<vmem>>, vector<1x1x8x8xf32>
    %198 = vector.shape_cast %197 : vector<1x1x8x8xf32> to vector<8x8xf32>
    %199 = vector.shape_cast %196 : vector<8x8xf32> to vector<1x1x8x8xf32>
    tpu.vector_store %arg8[%c0_63, %c0_64, %c0_65, %c0_66], %199 {strides = array<i32>} : memref<1x1x8x8xf32, #tpu.memory_space<vmem>>, vector<1x1x8x8xf32>,
    return
  }
  func.func @transform_0(%arg0: i32, %arg1: i32, %arg2: i32, %arg3: i32) -> (i32, i32, i32, i32) {
    %c0_i32 = arith.constant 0 : i32
    %c0_i32_0 = arith.constant 0 : i32
    return %arg1, %arg0, %arg2, %c0_i32 : i32, i32, i32, i32
  }
  func.func @transform_1(%arg0: i32, %arg1: i32, %arg2: i32, %arg3: i32) -> (i32, i32, i32, i32) {
    %c0_i32 = arith.constant 0 : i32
    %0 = arith.subi %c0_i32, %arg3 : i32
    %c0_i32_0 = arith.constant 0 : i32
    return %arg1, %arg0, %arg2, %0 : i32, i32, i32, i32
  }
  func.func @transform_2(%arg0: i32, %arg1: i32, %arg2: i32, %arg3: i32) -> (i32, i32, i32) {
    %c0_i32 = arith.constant 0 : i32
    %c0_i32_0 = arith.constant 0 : i32
    %c0_i32_1 = arith.constant 0 : i32
    return %arg0, %c0_i32, %c0_i32_0 : i32, i32, i32
  }
  func.func @transform_3(%arg0: i32, %arg1: i32, %arg2: i32, %arg3: i32) -> (i32, i32) {
    %c0_i32 = arith.constant 0 : i32
    %c0_i32_0 = arith.constant 0 : i32
    %c0_i32_1 = arith.constant 0 : i32
    return %c0_i32, %c0_i32_0 : i32, i32
  }
  func.func @transform_4(%arg0: i32, %arg1: i32, %arg2: i32, %arg3: i32) -> (i32, i32, i32, i32) {
    %c0_i32 = arith.constant 0 : i32
    %0 = arith.subi %c0_i32, %arg3 : i32
    %c0_i32_0 = arith.constant 0 : i32
    return %arg1, %arg0, %arg2, %0 : i32, i32, i32, i32
  }
}

</mosaic_0001>

<bundles_post_ra>
// kernel: tpu_custom_call.1
= control target key start
LH: loop header
LB: loop body
LE: loop exit
PB: predicated region body
PF: predicated region fallthrough
CT: control target
= control target key end

     0   :  { %9 = vsyncpa [#allocation5], 0  ;;  %s1301_s0 = inlined_call_operand.vmem [shape: f32[2,4,8,32], index: 0, kind: input, shape index: {}]   ;;  %s1302_s1 = inlined_call_operand.vmem [shape: f32[2,4,8,8], index: 1, kind: input, shape index: {}]   ;;  %s1303_s2 = inlined_call_operand.vmem [shape: f32[4,32,16], index: 2, kind: input, shape index: {}]   ;;  %s1304_s3 = inlined_call_operand.vmem [shape: f32[8,8], index: 3, kind: input, shape index: {}]   ;;  %s1305_s4 = inlined_call_operand.hbm [shape: f32[2,4,8,8], index: 4, kind: output, shape index: {}]  }
   0x1   :  { %11 = vsyncpa [#allocation5 + $0x1], 0  ;;  %s1133_s15 = smov 0   ;;  %s1135_s16 = smov 0  }
   0x2   :  { %s1137_s17 = smov 0   ;;  %s1139_s18 = smov 0  }
   0x3   :  { %s1141_s19 = smov 0   ;;  %s1143_s20 = smov 0  }
   0x4   :  { %s1145_s21 = smov 0   ;;  %s1147_s22 = smov 0  }
   0x5 LB: > { %s817_s23 = sadd.s32 4294967295, %s1086_s22   ;;  %s818_s24 = sadd.s32 4294967294, %s1086_s22   ;;  %s1086_s22 = sphi %s1147_s22, %s17_s22   ;;  %s1082_s21 = sphi %s1145_s21, %s1314_s21   ;;  %s1078_s20 = sphi %s1143_s20, %s1313_s20   ;;  %s1074_s19 = sphi %s1141_s19, %s1312_s19   ;;  %s1070_s18 = sphi %s1139_s18, %s1311_s18   ;;  %s1066_s17 = sphi %s1137_s17, %s1310_s17   ;;  %s1062_s16 = sphi %s1135_s16, %s1309_s16   ;;  %s1058_s15 = sphi %s1133_s15, %s1308_s15  }
   0x6   : > { %s39_s25 = sadd.s32 1, %s1078_s20  ;;  %s43_s26 = sadd.s32 1, %s1082_s21 }
   0x7   : > { %p41_p0 = scmp.ge.s32.totalorder %s39_s25, 2  ;;  %p179_p1 = scmp.ne.s32.totalorder %s1066_s17, %s1062_s16 }
   0x8   : > { %p180_p2 = scmp.eq.s32.totalorder %s817_s23, 7  ;;  %p185_p5 = scmp.ne.s32.totalorder %s1062_s16, %s1058_s15 }
   0x9   : > { %s1316_s25 = smov (%p41_p0, %s39_s25), 0  ;;  %s1318_s26 = smov (!%p41_p0, %s43_s26), %s1082_s21 }
   0xa   : > { %s160_s27 = ssub.s32 %s1078_s20, %s1316_s25  ;;  %p1184_p3 = por %p180_p2, %p179_p1 }
   0xb   : > { %p45_p4 = scmp.ge.s32.totalorder %s1318_s26, 4  ;;  %p186_p6 = scmp.eq.s32.totalorder %s818_s24, 7 }
   0xc   : > { %p821_p7 = scmp.ge.s32.totalorder %s1086_s22, 1  ;;  %p248_p9 = scmp.lt.s32.totalorder %s1086_s22, 9 }
   0xd   : > { %s1320_s26 = smov (%p45_p4, %s1318_s26), 0  ;;  %p1193_p8 = por %p186_p6, %p185_p5 }
   0xe   : > { %s161_s30 = ssub.s32 %s1082_s21, %s1320_s26  ;;  %s169_s5 = sadd.s32 1, %s1066_s17 }
   0xf   : > { %s162_s6 = sor.u32 %s161_s30, %s160_s27  ;;  %p249_p10 = pnand %p821_p7, %p248_p9 }
  0x10   : > { %p167_p11 = scmp.eq.s32.totalorder %s162_s6, 0  ;;  %p302_p12 = scmp.lt.s32.totalorder (!%p249_p10), %s1074_s19, 3  ;;  %vm418_vm0 = vcmask (!%p249_p10), 7168   ;;  %v1088_v0 = vmov (!%p249_p10), 0.0|0.0   ;;  %vm1089_vm1 = vmmov (!%p249_p10), 0   ;;  %v1090_v1 = vmov (!%p249_p10), 0.0  }
  0x11   : > { %252 = sbr.rel (%p249_p10) target bundleno = 451 (0x1c3), region = 36  ;;  %p300_p13 = scmp.lt.s32.totalorder (!%p249_p10), %s1070_s18, 1  ;;  %876 = vmatprep.subr.bf16.mxu0 (!%p249_p10), %v1088_v0  ;;  %868 = vmatprep.mubr.msk.f32.mxu0 (!%p249_p10), %vm1089_vm1, %v1090_v1  ;;  %419 = vst.msk [vmem:[#allocation3] sm:$0xff] (!%p249_p10), %vm418_vm0, %v1090_v1  ;;  %v427_v2 = vld [vmem:[%s1304_s3] sm:$0xff] (!%p249_p10)  ;;  %v1091_v3 = vmov (!%p249_p10), 0   ;;  %vm342_vm2 = vcmask (!%p249_p10), 261120  }
  0x12   : > { %s1202_s7 = scalar_select %p167_p11, %s1066_s17, %s169_s5  }
  0x13   : > { %871 = vmatprep.subr.mxu1 (!%p249_p10), %v1090_v1  ;;  %873 = vmatprep.mubr.msk.f32.mxu1 (!%p249_p10), %vm1089_vm1, %v1090_v1  ;;  %vm434_vm3 = vcmask (!%p249_p10), 64512   ;;  %v1092_v17 = vmov (!%p249_p10), 1   ;;  %vm416_vm4 = vcmask (!%p249_p10), 130048   ;;  %v1093_v21 = vmov (!%p249_p10), 2   ;;  %s848_s14 = sshll.u32 (!%p249_p10), %s1070_s18, 2  ;;  %s1107_s9 = smov (!%p249_p10), [#allocation4]  }
  0x14   : > { %872 = vmatpush3.msra.mxu1 (!%p249_p10), %v427_v2  ;;  %972 = vset.pattern.permute.xlu0 (!%p249_p10), %v1091_v3  ;;  %v1094_v22 = vmov (!%p249_p10), 3   ;;  %v1095_v23 = vmov (!%p249_p10), 4   ;;  %v1096_v24 = vmov (!%p249_p10), 6   ;;  %v1097_v29 = vmov (!%p249_p10), 5  }
  0x15   : > { %973 = vset.pattern.permute.xlu1 (!%p249_p10), %v1092_v17  ;;  %v1098_v30 = vmov (!%p249_p10), 9   ;;  %v1099_v31 = vmov (!%p249_p10), 7   ;;  %v1100_v32 = vmov (!%p249_p10), 12   ;;  %v1101_v33 = vmov (!%p249_p10), 8  }
  0x16   : > { %v1102_v34 = vmov (!%p249_p10), 15   ;;  %v1103_v35 = vmov (!%p249_p10), 10   ;;  %v1104_v36 = vmov (!%p249_p10), 11   ;;  %v1105_v37 = vmov (!%p249_p10), 13  }
  0x17   : > { %v1106_v38 = vmov (!%p249_p10), 14  }
  0x18   : > { %s303_s10 = scalar_select %p302_p12, %s1074_s19, 3  ;;  %v428_v9 = vld [vmem:[#allocation3] sm:$0xff] }
  0x19   : > { %s301_s11 = scalar_select %p300_p13, %s1070_s18, 1  ;;  %431 = vperm.xlu0 %972, %v428_v9  }
  0x1a   : > { %s852_s12 = sshll.u32 %s303_s10, 5 }
  0x1b   : > { %s331_s23 = scalar_lea.vmem %s1303_s2, %s852_s12  ;;  %s823_s24 = sshll.u32 %s301_s11, 2 }
  0x1c   : > { %v338_v4 = vld [vmem:[%s331_s23] sm:$0xff]  ;;  %v339_v5 = vld [vmem:[%s331_s23 + $0x8] sm:$0xff]  ;;  %v340_v6 = vld [vmem:[%s331_s23 + $0x10] sm:$0xff]  ;;  %s308_s27 = sadd.s32 %s823_s24, %s303_s10  ;;  %s297_s10 = sand.u32 1, %s1062_s16  }
  0x1d   : > { %v877_v7 = vpack.c.bf16 %v339_v5, %v338_v4  ;;  %v341_v8 = vld [vmem:[%s331_s23 + $0x18] sm:$0xff]  ;;  %s824_s30 = sshll.u32 %s308_s27, 3  ;;  %s822_s13 = sshll.u32 %s297_s10, 3 }
  0x1e   : > { %s325_s8 = scalar_lea.vmem %s1302_s1, %s824_s30  ;;  %v880_v10 = vpack.c.bf16 %v341_v8, %v340_v6  ;;  %s310_s11 = scalar_lea.vmem %s1301_s0, %s824_s30 }
  0x1f   : > { %878 = vmatpush3.bf16.msra.mxu0 %v877_v7  ;;  %v420_v11 = vld [vmem:[%s325_s8] sm:$0xff]  ;;  %s688_s23 = sadd.s32 %s1074_s19, %s848_s14  ;;  %s299_s27 = scalar_lea.vmem [#allocation4], %s822_s13 }
  0x20   : > { %879 = vmatprep.subr.bf16.mxu0 %v1088_v0  ;;  %v830_v12 = vmul.f32 -1.442695, %v420_v11  ;;  %v337_v13 = vld [vmem:[%s310_s11] sm:$0xff]  ;;  %s849_s24 = sshll.u32 %s688_s23, 7  ;;  %s692_s30 = sshll.u32 %s299_s27, 4  ;;  %s1249_s30 = int_to_ptr.vmem [resolvable:$true] %s692_s30 }
  0x21   : > { %s1247_s18 = scalar_lea.hbm %s1305_s4, %s849_s24  ;;  %s674_s19 = scalar_lea.sflag [#allocation5], %s297_s10 }
  0x22   : > { %988 = vpow2.f32 %v830_v12  ;;  %s992_s8 = scalar_lea.vmem %s1249_s30, 128  ;;  %s996_s12 = sshll.u32 %s1107_s9, 4  ;;  %s997_s12 = int_to_ptr.vmem [resolvable:$false] %s996_s12 }
  0x23   : > { %881 = vmatpush3.bf16.msra.mxu0 %v880_v10  ;;  %p993_p0 = scmp.ne.s32.totalorder %s1249_s30, %s992_s8  ;;  %s998_s11 = scalar_lea.vmem %s997_s12, 256 }
  0x24   : > { %p999_p4 = scmp.lt.s32.totalorder %s1249_s30, %s997_s12  ;;  %p1000_p5 = scmp.lt.s32.totalorder %s998_s11, %s992_s8 }
  0x25   : > { %p994_p1 = pnand %p993_p0, %p1184_p3 }
  0x26   : > { %869 = vmatmul.mubr.msk.f32.vlgmr.msra.gmra.mrb[0].mxu0 %vm342_vm2, %v337_v13  ;;  %p1001_p6 = por %p1000_p5, %p999_p4 }
  0x27   : > { %p995_p2 = pneg %p994_p1 }
  0x29   : > { %p1002_p7 = pnand %p1001_p6, %p995_p2 }
  0x2c   : > { %v989_v14 = vpop.eup %988 }
  0x2d   : > { %v424_v15 = vadd.f32 1.0, %v989_v14 }
  0x2f   : > { %990 = vrcp.f32 %v424_v15 }
  0x39   : > { %v991_v16 = vpop.eup %990 }
  0x3a   : > { %874 = vmatmul.mubr.msk.f32.vlgmr.msra.gmra.mrb[0].mxu1 %vm434_vm3, %v991_v16 }
  0x98   : > { %v432_v25 = vpop.permute.xlu0 %431 }
  0xf9   : > { %v412_v18 = vpop.f32.mrb[0].mxu0 }
  0xfa   : > { %417 = vst.msk [vmem:[#allocation2] sm:$0xff] %vm416_vm4, %v412_v18  ;;  %v870_v19 = vpop.f32.mrb[1].mxu0 }
 0x101   : > { %v511_v20 = vld [vmem:[#allocation2] sm:$0xff] }
 0x102   : > { %527 = vperm.xlu1 %973, %v511_v20   ;;  %517 = vperm.xlu0 %972, %v511_v20  }
 0x106   : > { %974 = vset.pattern.permute.xlu1 %v1093_v21  ;;  %975 = vset.pattern.permute.xlu0 %v1094_v22 }
 0x107   : > { %537 = vperm.xlu1 %974, %v511_v20   ;;  %547 = vperm.xlu0 %975, %v511_v20  }
 0x10b   : > { %976 = vset.pattern.permute.xlu1 %v1095_v23  ;;  %978 = vset.pattern.permute.xlu0 %v1096_v24 }
 0x10c   : > { %557 = vperm.xlu1 %976, %v511_v20   ;;  %577 = vperm.xlu0 %978, %v511_v20  }
 0x10d   : > { %v504_v26 = vpop.f32.mrb[0].mxu1 }
 0x10e   : > { %v505_v27 = vadd.f32 %v504_v26, %v432_v25  ;;  %v875_v28 = vpop.f32.mrb[1].mxu1 }
 0x110   : > { %977 = vset.pattern.permute.xlu1 %v1097_v29  ;;  %981 = vset.pattern.permute.xlu0 %v1098_v30  ;;  %509 = vst.msk [vmem:[#allocation3] sm:$0xff] %vm418_vm0, %v505_v27  ;;  %v1223_v39 = vmin.f32 %v505_v27, 15.0 }
 0x111   : > { %567 = vperm.xlu1 %977, %v511_v20   ;;  %607 = vperm.xlu0 %981, %v511_v20  }
 0x112   : > { %v832_v40 = vadd.f32 -1.0, %v1223_v39  ;;  %v512_v42 = vand.u32 2147483647, %v1223_v39  ;;  %v833_v43 = vadd.f32 -2.0, %v1223_v39  ;;  %v834_v47 = vadd.f32 -3.0, %v1223_v39 }
 0x113   : > { %v835_v48 = vadd.f32 -4.0, %v1223_v39  ;;  %v836_v56 = vadd.f32 -5.0, %v1223_v39  ;;  %v837_v61 = vadd.f32 -6.0, %v1223_v39  ;;  %v838_v4 = vadd.f32 -7.0, %v1223_v39 }
 0x114   : > { %v523_v41 = vand.u32 2147483647, %v832_v40  ;;  %v513_v45 = vsub.f32 1.0, %v512_v42  ;;  %v533_v46 = vand.u32 2147483647, %v833_v43  ;;  %v839_v17 = vadd.f32 -8.0, %v1223_v39 }
 0x115   : > { %979 = vset.pattern.permute.xlu1 %v1099_v31  ;;  %984 = vset.pattern.permute.xlu0 %v1100_v32  ;;  %v543_v52 = vand.u32 2147483647, %v834_v47  ;;  %v553_v55 = vand.u32 2147483647, %v835_v48  ;;  %v563_v63 = vand.u32 2147483647, %v836_v56 }
 0x116   : > { %587 = vperm.xlu1 %979, %v511_v20   ;;  %637 = vperm.xlu0 %984, %v511_v20   ;;  %v524_v44 = vsub.f32 1.0, %v523_v41  ;;  %v514_v50 = vmax.f32 %v513_v45, 0.0  ;;  %v534_v51 = vsub.f32 1.0, %v533_v46  ;;  %v573_v6 = vand.u32 2147483647, %v837_v61 }
 0x117   : > { %v544_v60 = vsub.f32 1.0, %v543_v52  ;;  %v554_v62 = vsub.f32 1.0, %v553_v55  ;;  %v564_v9 = vsub.f32 1.0, %v563_v63  ;;  %v583_v12 = vand.u32 2147483647, %v838_v4 }
 0x118   : > { %v525_v49 = vmax.f32 %v524_v44, 0.0  ;;  %v535_v59 = vmax.f32 %v534_v51, 0.0  ;;  %v574_v13 = vsub.f32 1.0, %v573_v6  ;;  %v840_v18 = vadd.f32 -9.0, %v1223_v39 }
 0x119   : > { %v545_v3 = vmax.f32 %v544_v60, 0.0  ;;  %v555_v8 = vmax.f32 %v554_v62, 0.0  ;;  %v565_v16 = vmax.f32 %v564_v9, 0.0  ;;  %v584_v19 = vsub.f32 1.0, %v583_v12 }
 0x11a   : > { %980 = vset.pattern.permute.xlu1 %v1101_v33  ;;  %987 = vset.pattern.permute.xlu0 %v1102_v34  ;;  %v575_v22 = vmax.f32 %v574_v13, 0.0  ;;  %v593_v24 = vand.u32 2147483647, %v839_v17  ;;  %v603_v26 = vand.u32 2147483647, %v840_v18  ;;  %v841_v29 = vadd.f32 -10.0, %v1223_v39 }
 0x11b   : > { %597 = vperm.xlu1 %980, %v511_v20   ;;  %667 = vperm.xlu0 %987, %v511_v20   ;;  %v585_v28 = vmax.f32 %v584_v19, 0.0  ;;  %v846_v60 = vadd.f32 -15.0, %v1223_v39 }
 0x11c   : > { %v594_v32 = vsub.f32 1.0, %v593_v24  ;;  %v604_v33 = vsub.f32 1.0, %v603_v26 }
 0x11e   : > { %v595_v40 = vmax.f32 %v594_v32, 0.0  ;;  %v605_v41 = vmax.f32 %v604_v33, 0.0 }
 0x11f   : > { %982 = vset.pattern.permute.xlu1 %v1103_v35 }
 0x120   : > { %617 = vperm.xlu1 %982, %v511_v20  }
 0x124   : > { %983 = vset.pattern.permute.xlu1 %v1104_v36  ;;  %v613_v36 = vand.u32 2147483647, %v841_v29 }
 0x125   : > { %627 = vperm.xlu1 %983, %v511_v20  }
 0x126   : > { %v614_v45 = vsub.f32 1.0, %v613_v36 }
 0x128   : > { %v615_v52 = vmax.f32 %v614_v45, 0.0 }
 0x129   : > { %985 = vset.pattern.permute.xlu1 %v1105_v37  ;;  %v842_v37 = vadd.f32 -11.0, %v1223_v39 }
 0x12a   : > { %647 = vperm.xlu1 %985, %v511_v20  }
 0x12b   : > { %v623_v46 = vand.u32 2147483647, %v842_v37 }
 0x12e   : > { %986 = vset.pattern.permute.xlu1 %v1106_v38  ;;  %v843_v38 = vadd.f32 -12.0, %v1223_v39 }
 0x12f   : > { %657 = vperm.xlu1 %986, %v511_v20  }
 0x130   : > { %v633_v48 = vand.u32 2147483647, %v843_v38 }
 0x132   : > { %v634_v55 = vsub.f32 1.0, %v633_v48 }
 0x134   : > { %v635_v62 = vmax.f32 %v634_v55, 0.0 }
 0x181   : > { %v528_v53 = vpop.permute.xlu1 %527  ;;  %v518_v54 = vpop.permute.xlu0 %517 }
 0x182   : > { %v530_v57 = vmul.f32 %v528_v53, %v525_v49  ;;  %v520_v58 = vmul.f32 %v518_v54, %v514_v50  ;;  %v844_v50 = vadd.f32 -13.0, %v1223_v39  ;;  %v624_v54 = vsub.f32 1.0, %v623_v46 }
 0x184   : > { %v531_v1 = vadd.f32 %v530_v57, %v520_v58  ;;  %v643_v58 = vand.u32 2147483647, %v844_v50  ;;  %v625_v61 = vmax.f32 %v624_v54, 0.0 }
 0x186   : > { %v538_v0 = vpop.permute.xlu1 %537  ;;  %v548_v5 = vpop.permute.xlu0 %547 }
 0x187   : > { %v540_v2 = vmul.f32 %v538_v0, %v535_v59  ;;  %v550_v10 = vmul.f32 %v548_v5, %v545_v3  ;;  %v845_v59 = vadd.f32 -14.0, %v1223_v39  ;;  %v663_v5 = vand.u32 2147483647, %v846_v60 }
 0x189   : > { %v541_v7 = vadd.f32 %v540_v2, %v531_v1  ;;  %v644_v2 = vsub.f32 1.0, %v643_v58  ;;  %v653_v3 = vand.u32 2147483647, %v845_v59  ;;  %v664_v39 = vsub.f32 1.0, %v663_v5 }
 0x18b   : > { %v558_v11 = vpop.permute.xlu1 %557  ;;  %v551_v14 = vadd.f32 %v550_v10, %v541_v7  ;;  %v578_v25 = vpop.permute.xlu0 %577  ;;  %v654_v10 = vsub.f32 1.0, %v653_v3 }
 0x18c   : > { %v560_v15 = vmul.f32 %v558_v11, %v555_v8  ;;  %v580_v30 = vmul.f32 %v578_v25, %v575_v22  ;;  %v645_v8 = vmax.f32 %v644_v2, 0.0 }
 0x18d   : > { %v655_v13 = vmax.f32 %v654_v10, 0.0 }
 0x18e   : > { %v561_v21 = vadd.f32 %v560_v15, %v551_v14 }
 0x190   : > { %v568_v20 = vpop.permute.xlu1 %567  ;;  %v608_v47 = vpop.permute.xlu0 %607 }
 0x191   : > { %v570_v23 = vmul.f32 %v568_v20, %v565_v16  ;;  %v610_v51 = vmul.f32 %v608_v47, %v605_v41  ;;  %v665_v16 = vmax.f32 %v664_v39, 0.0 }
 0x193   : > { %v571_v27 = vadd.f32 %v570_v23, %v561_v21 }
 0x195   : > { %v588_v31 = vpop.permute.xlu1 %587  ;;  %v581_v34 = vadd.f32 %v580_v30, %v571_v27  ;;  %v638_v4 = vpop.permute.xlu0 %637 }
 0x196   : > { %v590_v35 = vmul.f32 %v588_v31, %v585_v28  ;;  %v640_v7 = vmul.f32 %v638_v4, %v635_v62 }
 0x198   : > { %v591_v43 = vadd.f32 %v590_v35, %v581_v34 }
 0x19a   : > { %v598_v42 = vpop.permute.xlu1 %597  ;;  %v668_v14 = vpop.permute.xlu0 %667 }
 0x19b   : > { %v600_v44 = vmul.f32 %v598_v42, %v595_v40  ;;  %v670_v19 = vmul.f32 %v668_v14, %v665_v16 }
 0x19d   : > { %v601_v49 = vadd.f32 %v600_v44, %v591_v43 }
 0x19f   : > { %v618_v53 = vpop.permute.xlu1 %617  ;;  %v611_v56 = vadd.f32 %v610_v51, %v601_v49 }
 0x1a0   : > { %v620_v57 = vmul.f32 %v618_v53, %v615_v52 }
 0x1a2   : > { %v621_v0 = vadd.f32 %v620_v57, %v611_v56 }
 0x1a4   : > { %v628_v63 = vpop.permute.xlu1 %627 }
 0x1a5   : > { %v630_v1 = vmul.f32 %v628_v63, %v625_v61 }
 0x1a7   : > { %v631_v6 = vadd.f32 %v630_v1, %v621_v0 }
 0x1a9   : > { %v648_v9 = vpop.permute.xlu1 %647  ;;  %v641_v11 = vadd.f32 %v640_v7, %v631_v6 }
 0x1aa   : > { %v650_v12 = vmul.f32 %v648_v9, %v645_v8 }
 0x1ac   : > { %v651_v17 = vadd.f32 %v650_v12, %v641_v11 }
 0x1ae   : > { %v658_v15 = vpop.permute.xlu1 %657 }
 0x1af   : > { %v660_v18 = vmul.f32 %v658_v15, %v655_v13 }
 0x1b1   : > { %v661_v20 = vadd.f32 %v660_v18, %v651_v17 }
 0x1b3   : > { %v671_v21 = vadd.f32 %v670_v19, %v661_v20 }
 0x1b5   : > { %672 = vst.msk [vmem:[%s299_s27] sm:$0xff] %vm434_vm3, %v671_v21 }
 0x1b6   : > { %1005 = shalt.err (!%p1002_p7)
}
 0x1b7   : > { %s1006_s10 = scalar_lea.hbm %s1247_s18, 128  ;;  %s1010_s23 = scalar_lea.hbm %s1305_s4, 1024 }
 0x1b8   : > { %p1007_p9 = scmp.ne.s32.totalorder %s1247_s18, %s1006_s10  ;;  %p1011_p12 = scmp.lt.u32.totalorder %s1247_s18, %s1305_s4 }
 0x1b9   : > { %p1012_p13 = scmp.lt.u32.totalorder %s1010_s23, %s1006_s10  ;;  %p1014_p1 = scmp.lt.u32.totalorder %s1006_s10, %s1247_s18 }
 0x1ba   : > { %p1008_p10 = pnand %p1007_p9, %p1184_p3 }
 0x1bb   : > { %p1013_p0 = por %p1012_p13, %p1011_p12 }
 0x1bc   : > { %p1009_p11 = pneg %p1008_p10 }
 0x1bd   : > { %p1015_p2 = por %p1014_p1, %p1013_p0 }
 0x1bf   : > { %p1016_p4 = pnand %p1015_p2, %p1009_p11 }
 0x1c1   : > { %1019 = shalt.err (!%p1016_p4)
}
 0x1c2   : > { %882 = dma.vmem_to_hbm [thread:$0]  (%p1184_p3), %s1249_s30, 128, %s1247_s18, %s674_s19  }
 0x1c3 PF: > { %p888_p5 = scmp.ge.s32.totalorder %s1086_s22, 2  ;;  %s704_s5 = sand.u32 1, %s1058_s15  }
 0x1c4   : > { %s705_s6 = scalar_lea.sflag [#allocation5], %s704_s5 }
 0x1c5   : > { %p885_p6 = pnand %p888_p5, %p1193_p8 }
 0x1c7   : > { %1053 = dma.done.wait (!%p885_p6), %s705_s6, 128  }
 0x1c8   : > { %1055 = vsyncadd (!%p885_p6), %s705_s6, 4294967168  ;;  %s17_s22 = sadd.s32 1, %s1086_s22   ;;  %s1308_s15 = smov %s1062_s16 }
 0x1c9   : > { %p14_p7 = scmp.ge.s32.totalorder %s17_s22, 10   ;;  %s1309_s16 = smov %s1066_s17 }
 0x1ca   : > { %s1310_s17 = smov %s1202_s7  ;;  %s1311_s18 = smov %s1078_s20 }
 0x1cb   : > { %s1312_s19 = smov %s1082_s21  ;;  %s1313_s20 = smov %s1316_s25 }
 0x1cc   : > { %s1314_s21 = smov %s1320_s26  ;;  %16 = sbr.rel (!%p14_p7) target bundleno = 5 (0x5), region = 81 }
 0x1d3   :  { %710 = vsyncpa [#allocation5], 1 }
 0x1d4   :  { %712 = vsyncpa [#allocation5 + $0x1], 1 }

</bundles_post_ra>
